<compile_context>
chip_gen: v5e
topology: v5e:2x2
jax: 0.10.0
libtpu: 0.0.40
codegen_flags: <defaults>
</compile_context>

<pallas_src>
import math
import functools

import jax
import jax.numpy as jnp
from jax.experimental import pallas as pl
from jax.experimental.pallas import tpu as pltpu


def _sigsoftmax_kernel(x_ref, o_ref, *, log_base):
    # x_ref: (TILE_R, D) block; the full reduction axis D is inside the block.
    x = x_ref[...].astype(jnp.float32)
    # base ** x == exp(x * ln(base)); skip the multiply for the euler base.
    t = x if log_base == 1.0 else x * jnp.float32(log_base)

    # Row-max shift: e in (0, 1], never overflows; exp(m) cancels on normalize.
    m = jnp.max(t, axis=-1, keepdims=True)
    e = jnp.exp(t - m)

    # num = exp(t-m) * sigmoid(t) = e^2 / (e + c) with c = exp(-m) (one exp/row).
    # Clamp m only for c so c itself can never over/underflow.
    c = jnp.exp(-jnp.clip(m, -87.0, 87.0))
    d = e + c
    # Approx EUP reciprocal + one Newton-Raphson refinement (2 FMAs) instead of
    # an exact per-element divide: keeps accuracy well under 1e-5 while
    # removing the rcp+Newton-chain of exact division from the EUP/VALU slots.
    r = pl.reciprocal(d, approx=True)
    r = r * (jnp.float32(2.0) - d * r)
    num = (e * e) * r

    denom = jnp.sum(num, axis=-1, keepdims=True)
    inv = pl.reciprocal(denom)  # exact; one per row instead of D divides
    o_ref[...] = (num * inv).astype(o_ref.dtype)


def sigsoftmax(x, base=math.e, target_block_bytes=2 * 1024 * 1024,
               min_grid_blocks=4):
    """SigSoftmax along the last axis of x (any rank >= 1)."""
    orig_shape = x.shape
    orig_dtype = x.dtype
    if x.ndim == 1:
        x = x[None, :]

    D = x.shape[-1]
    R = 1
    for s in x.shape[:-1]:
        R *= s
    x2d = x.reshape(R, D)

    log_base = float(math.log(base))

    # Lane-dense last dim: pad D to a multiple of 128 with a value whose exp
    # underflows to 0 (adds 0 to the row sum); slice the output back.
    Dp = ((D + 127) // 128) * 128
    if Dp != D:
        pad_val = -1e30 if log_base >= 0.0 else 1e30
        x2d = jnp.pad(x2d, ((0, 0), (0, Dp - D)), constant_values=pad_val)

    itemsize = jnp.dtype(orig_dtype).itemsize
    # Sublane divisibility requirement: 8 (f32), 16 (bf16/f16), 32 (int8/fp8).
    sublane = max(8, 32 // max(1, itemsize))

    # Size the row tile from the f32 *working* footprint (kernel upcasts and
    # materializes t/e/num at tile size), not from the input itemsize.
    row_f32_bytes = Dp * 4
    tr = (target_block_bytes // row_f32_bytes) // sublane * sublane
    tr = max(sublane, tr)
    # Cap so the grid has >= min_grid_blocks steps when R allows: keeps the
    # BlockSpec pipeline overlapping HBM read/write with compute and lets the
    # "parallel" axis shard across v7x's two TensorCores.
    tr = min(tr, sublane * max(1, pl.cdiv(R, min_grid_blocks * sublane)))
    # tr == R (full array extent) is always a legal block dim, even if R is
    # not a multiple of the sublane count.
    tr = min(tr, R)

    grid = (pl.cdiv(R, tr),)  # ragged tail handled by Pallas OOB masking
                              # (rows are independent, outputs masked)

    # VMEM budget: double-buffered (in + out) blocks + a few f32 tile-sized
    # temporaries + margin, clamped so it stays inside v7x's 64 MiB per TC.
    in_blk = tr * Dp * itemsize
    f32_blk = tr * Dp * 4
    vmem_needed = 4 * in_blk + 6 * f32_blk + (2 << 20)
    vmem_limit = int(min(max(vmem_needed, 32 << 20), 64 << 20))

    n_elems = R * Dp
    cost = pl.CostEstimate(
        flops=8 * n_elems,                     # sub/add/mul/FMA per element
        transcendentals=2 * n_elems + R,       # exp + approx rcp per elem, exp per row
        bytes_accessed=2 * n_elems * itemsize, # streaming in + out
    )

    kernel = functools.partial(_sigsoftmax_kernel, log_base=log_base)

    out2d = pl.pallas_call(
        kernel,
        out_shape=jax.ShapeDtypeStruct((R, Dp), orig_dtype),
        grid_spec=pltpu.PrefetchScalarGridSpec(
            num_scalar_prefetch=0,
            grid=grid,
            in_specs=[pl.BlockSpec((tr, Dp), lambda i: (i, 0))],
            out_specs=pl.BlockSpec((tr, Dp), lambda i: (i, 0)),
        ),
        compiler_params=pltpu.CompilerParams(
            dimension_semantics=("parallel",),  # v7x: shard row blocks on 2 TCs
            vmem_limit_bytes=vmem_limit,
        ),
        cost_estimate=cost,
    )(x2d)

    if Dp != D:
        out2d = out2d[:, :D]
    return out2d.reshape(orig_shape)


def _reference_sigsoftmax(x, base=math.e):
    xf = x.astype(jnp.float32)
    exp_x = jnp.power(base, xf)
    sig_x = 1.0 / (1.0 + jnp.power(base, -xf))
    num = exp_x * sig_x
    den = jnp.sum(num, axis=-1, keepdims=True)
    return (num / den).astype(x.dtype)


if __name__ == "__main__":
    key = jax.random.PRNGKey(0)
    k1, k2 = jax.random.split(key)

    # Attention-logit-like shape (lane-dense last dim): (B, H, T, D).
    x = jax.random.normal(k1, (2, 4, 16, 128), dtype=jnp.float32)
    out = jax.block_until_ready(sigsoftmax(x))   # euler base (valid PyTorch path)
    ref = _reference_sigsoftmax(x)
    assert out.shape == x.shape and out.dtype == x.dtype
    assert jnp.allclose(out, ref, atol=1e-5, rtol=1e-5), "mismatch vs reference (D=128)"
    assert jnp.allclose(jnp.sum(out, axis=-1), 1.0, atol=1e-5)

    # Non-multiple-of-128 last dim exercises the lane-padding path.
    y = jax.random.normal(k2, (4, 10, 100), dtype=jnp.float32)
    out_y = jax.block_until_ready(sigsoftmax(y))
    ref_y = _reference_sigsoftmax(y)
    assert out_y.shape == y.shape and out_y.dtype == y.dtype
    assert jnp.allclose(out_y, ref_y, atol=1e-5, rtol=1e-5), "mismatch vs reference (D=100)"
    assert jnp.allclose(jnp.sum(out_y, axis=-1), 1.0, atol=1e-5)

    print("KERNEL_OK")
</pallas_src>

<mosaic_0001>
module attributes {stable_mosaic.version = 11 : i64} {
  func.func @_sigsoftmax_kernel(%arg0: i32, %arg1: memref<32x128xf32, #tpu.memory_space<vmem>>, %arg2: memref<32x128xf32, #tpu.memory_space<vmem>>) attributes {dimension_semantics = [#tpu.dimension_semantics<parallel>], iteration_bounds = array<i64: 4>, scalar_prefetch = 0 : i64, scratch_operands = 0 : i64, tpu.core_type = #tpu.core_type<tc>, window_params = [{transform_indices = @transform_0, window_bounds = array<i64: 32, 128>}, {transform_indices = @transform_1, window_bounds = array<i64: 32, 128>}]} {
    %c0 = arith.constant 0 : index
    %c0_0 = arith.constant 0 : index
    %0 = vector.load %arg1[%c0, %c0_0] : memref<32x128xf32, #tpu.memory_space<vmem>>, vector<32x128xf32>
    %cst = arith.constant dense<0xFF800000> : vector<32xf32>
    %1 = vector.multi_reduction <maximumf>, %0, %cst [1] : vector<32x128xf32> to vector<32xf32>
    %2 = vector.shape_cast %1 : vector<32xf32> to vector<32x1xf32>
    %3 = vector.broadcast %2 : vector<32x1xf32> to vector<32x128xf32>
    %4 = arith.subf %0, %3 : vector<32x128xf32>
    %5 = math.exp %4 : vector<32x128xf32>
    %cst_1 = arith.constant -8.700000e+01 : f32
    %cst_2 = arith.constant 8.700000e+01 : f32
    %6 = vector.broadcast %cst_1 : f32 to vector<32x1xf32>
    %7 = arith.maximumf %6, %2 : vector<32x1xf32>
    %8 = vector.broadcast %cst_2 : f32 to vector<32x1xf32>
    %9 = arith.minimumf %8, %7 : vector<32x1xf32>
    %cst_3 = arith.constant 0.000000e+00 : f32
    %10 = vector.broadcast %cst_3 : f32 to vector<32x1xf32>
    %11 = arith.subf %10, %9 : vector<32x1xf32>
    %12 = math.exp %11 : vector<32x1xf32>
    %13 = vector.broadcast %12 : vector<32x1xf32> to vector<32x128xf32>
    %14 = arith.addf %5, %13 : vector<32x128xf32>
    %15 = tpu.reciprocal %14 {approx = true} : vector<32x128xf32> -> vector<32x128xf32>
    %16 = arith.mulf %14, %15 : vector<32x128xf32>
    %cst_4 = arith.constant 2.000000e+00 : f32
    %17 = vector.broadcast %cst_4 : f32 to vector<32x128xf32>
    %18 = arith.subf %17, %16 : vector<32x128xf32>
    %19 = arith.mulf %15, %18 : vector<32x128xf32>
    %20 = arith.mulf %5, %5 : vector<32x128xf32>
    %21 = arith.mulf %20, %19 : vector<32x128xf32>
    %cst_5 = arith.constant dense<0.000000e+00> : vector<32xf32>
    %22 = vector.multi_reduction <add>, %21, %cst_5 [1] : vector<32x128xf32> to vector<32xf32>
    %23 = vector.shape_cast %22 : vector<32xf32> to vector<32x1xf32>
    %24 = tpu.reciprocal %23 : vector<32x1xf32> -> vector<32x1xf32>
    %25 = vector.broadcast %24 : vector<32x1xf32> to vector<32x128xf32>
    %26 = arith.mulf %21, %25 : vector<32x128xf32>
    %c0_6 = arith.constant 0 : index
    %c0_7 = arith.constant 0 : index
    %27 = vector.load %arg2[%c0_6, %c0_7] : memref<32x128xf32, #tpu.memory_space<vmem>>, vector<32x128xf32>
    tpu.vector_store %arg2[%c0_6, %c0_7], %26 {strides = array<i32>} : memref<32x128xf32, #tpu.memory_space<vmem>>, vector<32x128xf32>,
    return
  }
  func.func @transform_0(%arg0: i32) -> (i32, i32) {
    %c0_i32 = arith.constant 0 : i32
    %c0_i32_0 = arith.constant 0 : i32
    return %arg0, %c0_i32 : i32, i32
  }
  func.func @transform_1(%arg0: i32) -> (i32, i32) {
    %c0_i32 = arith.constant 0 : i32
    %c0_i32_0 = arith.constant 0 : i32
    return %arg0, %c0_i32 : i32, i32
  }
}

</mosaic_0001>

<bundles_post_ra>
// kernel: tpu_custom_call.1
= control target key start
LH: loop header
LB: loop body
LE: loop exit
PB: predicated region body
PF: predicated region fallthrough
CT: control target
= control target key end

     0   :  { %6 = vsyncpa [#allocation3], 0  ;;  %s730_s0 = inlined_call_operand.hbm [shape: f32[128,128], index: 0, kind: input, shape index: {}]   ;;  %s731_s1 = inlined_call_operand.hbm [shape: f32[128,128], index: 1, kind: output, shape index: {}]  }
   0x1   :  { %8 = vsyncpa [#allocation3 + $0x1], 0 }
   0x2   :  { %9 = vsyncpa [#allocation4], 0 }
   0x3   :  { %11 = vsyncpa [#allocation4 + $0x1], 0  ;;  %s586_s6 = smov 0   ;;  %s588_s7 = smov 0  }
   0x4   :  { %s590_s8 = smov 0   ;;  %s592_s9 = smov 0  }
   0x5 LB: > { %s607_s10 = sadd.s32 4294967295, %s570_s9   ;;  %s372_s11 = sadd.s32 4294967294, %s570_s9   ;;  %s570_s9 = sphi %s592_s9, %s740_s9   ;;  %s566_s8 = sphi %s590_s8, %s739_s8   ;;  %s562_s7 = sphi %s588_s7, %s738_s7   ;;  %s558_s6 = sphi %s586_s6, %s737_s6  }
   0x6   : > { %s611_s12 = sadd.s32 1, %s570_s9   ;;  %s24_s13 = sadd.s32 1, %s566_s8 }
   0x7   : > { %s21_s14 = ssub.s32 %s570_s9, %s611_s12  ;;  %p31_p0 = scmp.ne.s32.totalorder %s566_s8, %s562_s7 }
   0x8   : > { %p22_p1 = scmp.eq.s32.totalorder %s21_s14, 0  ;;  %p32_p2 = scmp.eq.s32.totalorder %s570_s9, 0 }
   0x9   : > { %p37_p3 = scmp.ne.s32.totalorder %s562_s7, %s558_s6  ;;  %p38_p4 = scmp.eq.s32.totalorder %s607_s10, 0 }
   0xa   : > { %s623_s15 = scalar_select %p22_p1, %s566_s8, %s24_s13  }
   0xb   : > { %p625_p5 = por %p32_p2, %p31_p0  ;;  %p629_p6 = por %p38_p4, %p37_p3 }
   0xc   : > { %p61_p7 = scmp.eq.s32.totalorder %s607_s10, 3  ;;  %p67_p8 = scmp.eq.s32.totalorder %s372_s11, 3 }
   0xd   : > { %p404_p9 = scmp.lt.s32.totalorder %s570_s9, 4  ;;  %s87_s20 = sand.u32 1, %s566_s8  }
   0xe   : > { %p635_p10 = por %p61_p7, %p31_p0  ;;  %p639_p11 = por %p67_p8, %p37_p3 }
   0xf   : > { %s390_s21 = sshll.u32 %s570_s9, 5  ;;  %s375_s22 = sshll.u32 %s87_s20, 5 }
  0x10   : > { %s96_s25 = scalar_lea.hbm %s730_s0, %s390_s21  ;;  %s91_s27 = scalar_lea.vmem [#allocation2], %s375_s22 }
  0x11   : > { %s97_s26 = sshll.u32 %s96_s25, 4  ;;  %s99_s28 = sshll.u32 %s91_s27, 4  ;;  %s98_s26 = int_to_ptr.hbm [resolvable:$true] %s97_s26  ;;  %s100_s28 = int_to_ptr.vmem [resolvable:$true] %s99_s28 }
  0x12   : > { %p650_p12 = pnand %p404_p9, %p625_p5  ;;  %p378_p13 = scmp.ge.s32.totalorder %s570_s9, 1 }
  0x13   : > { %p107_p0 = scmp.lt.s32.totalorder %s570_s9, 5  ;;  %s88_s30 = scalar_lea.sflag [#allocation3], %s87_s20 }
  0x14   : > { %s474_s2 = sshra.s32 %s98_s26, 4  ;;  %p478_p2 = pneg %p650_p12  ;;  %s475_s2 = int_to_ptr.hbm [resolvable:$true] %s474_s2 }
  0x15   : > { %s476_s3 = scalar_lea.hbm %s475_s2, 32  ;;  %s481_s11 = scalar_lea.hbm %s730_s0, 128 }
  0x16   : > { %p477_p1 = scmp.ne.s32.totalorder %s475_s2, %s476_s3  ;;  %p482_p5 = scmp.lt.s32.totalorder %s475_s2, %s730_s0 }
  0x17   : > { %p483_p7 = scmp.lt.s32.totalorder %s481_s11, %s476_s3 }
  0x18   : > { %p479_p3 = pnand %p478_p2, %p477_p1 }
  0x19   : > { %p484_p8 = por %p483_p7, %p482_p5 }
  0x1a   : > { %p480_p4 = pneg %p479_p3 }
  0x1c   : > { %p485_p9 = pnand %p484_p8, %p480_p4 }
  0x1e   : > { %488 = shalt.err (!%p485_p9)
}
  0x1f   : > { %s572_s16 = smov 128   ;;  %s573_s20 = smov 8  }
  0x20   : > { %399 = dma.hbm_to_vmem [thread:$0]  (!%p650_p12), %s98_s26, 512, %s100_s28, %s88_s30, %s572_s16, %s572_s16, %s573_s20  }
  0x21   : > { %p108_p1 = pnand %p378_p13, %p107_p0 }
  0x22   : > { %s671_s21 = sand.u32 (!%p108_p1), 1, %s562_s7  }
  0x23   : > { %111 = sbr.rel (%p108_p1) target bundleno = 337 (0x151), region = 24  ;;  %s379_s22 = sshll.u32 (!%p108_p1), %s671_s21, 5 }
  0x24   : > { %s114_s23 = scalar_lea.sflag (!%p108_p1), [#allocation3], %s671_s21  ;;  %s117_s24 = scalar_lea.vmem (!%p108_p1), [#allocation2], %s379_s22 }
  0x28   : > { %549 = dma.done.wait (%p629_p6), %s114_s23, 512  }
  0x29   : > { %551 = vsyncadd (%p629_p6), %s114_s23, 4294966784  ;;  %v141_v0 = vld [vmem:[%s117_s24 + $0x10] sm:$0xff]  ;;  %v139_v1 = vld [vmem:[%s117_s24] sm:$0xff]  ;;  %s391_s17 = sshll.u32 %s607_s10, 5  ;;  %s136_s25 = scalar_lea.vmem [#allocation5], %s379_s22 }
  0x2a   : > { %147 = vmax.xlane.f32.xlu1 %v141_v0  ;;  %143 = vmax.xlane.f32.xlu0 %v139_v1  ;;  %v142_v2 = vld [vmem:[%s117_s24 + $0x18] sm:$0xff]  ;;  %v140_v3 = vld [vmem:[%s117_s24 + $0x8] sm:$0xff]  ;;  %s295_s28 = scalar_lea.hbm %s731_s1, %s391_s17  ;;  %s296_s10 = sshll.u32 %s136_s25, 4  ;;  %s297_s10 = int_to_ptr.vmem [resolvable:$true] %s296_s10 }
  0x2b   : > { %s298_s29 = sshll.u32 %s295_s28, 4  ;;  %s284_s30 = scalar_lea.sflag [#allocation4], %s671_s21  ;;  %s299_s29 = int_to_ptr.hbm [resolvable:$true] %s298_s29 }
  0x2c   : > { %s518_s2 = sshra.s32 %s299_s29, 4  ;;  %s524_s11 = scalar_lea.hbm %s731_s1, 128  ;;  %s519_s2 = int_to_ptr.hbm [resolvable:$true] %s518_s2 }
  0x2d   : > { %s520_s3 = scalar_lea.hbm %s519_s2, 32  ;;  %p525_p0 = scmp.lt.s32.totalorder %s519_s2, %s731_s1 }
  0x2e   : > { %p521_p6 = scmp.ne.s32.totalorder %s519_s2, %s520_s3  ;;  %p526_p2 = scmp.lt.s32.totalorder %s524_s11, %s520_s3 }
  0x30   : > { %p522_p12 = pnand %p521_p6, %p635_p10  ;;  %p527_p3 = por %p526_p2, %p525_p0 }
  0x32   : > { %149 = vmax.xlane.f32.xlu1 %v142_v2  ;;  %145 = vmax.xlane.f32.xlu0 %v140_v3  ;;  %p523_p13 = pneg %p522_p12 }
  0x34   : > { %p528_p4 = pnand %p527_p3, %p523_p13 }
  0x9d   : > { %v148_v4 = vpop.xlane.xlu1 %147  ;;  %v144_v5 = vpop.xlane.xlu0 %143 }
  0x9e   : > { %v153_v6 = vsub.f32 %v141_v0, %v148_v4  ;;  %v383_v7 = vclamps-f32 %v148_v4, 87.0  ;;  %v151_v8 = vsub.f32 %v139_v1, %v144_v5  ;;  %v381_v9 = vclamps-f32 %v144_v5, 87.0 }
  0xa0   : > { %v159_v10 = vmul.f32 1.442695, %v153_v6  ;;  %v173_v11 = vsub.f32 0.0, %v383_v7  ;;  %v155_v12 = vmul.f32 1.442695, %v151_v8  ;;  %v171_v13 = vsub.f32 0.0, %v381_v9 }
  0xa2   : > { %442 = vpow2.f32 %v159_v10  ;;  %v179_v14 = vmul.f32 1.442695, %v173_v11  ;;  %v175_v15 = vmul.f32 1.442695, %v171_v13 }
  0xa3   : > { %444 = vpow2.f32 %v155_v12 }
  0xa4   : > { %446 = vpow2.f32 %v179_v14 }
  0xa5   : > { %448 = vpow2.f32 %v175_v15  ;;  %v150_v16 = vpop.xlane.xlu1 %149  ;;  %v146_v17 = vpop.xlane.xlu0 %145 }
  0xa6   : > { %v154_v18 = vsub.f32 %v142_v2, %v150_v16  ;;  %v384_v19 = vclamps-f32 %v150_v16, 87.0  ;;  %v152_v20 = vsub.f32 %v140_v3, %v146_v17  ;;  %v382_v21 = vclamps-f32 %v146_v17, 87.0 }
  0xa8   : > { %v443_v22 = vpop.eup %442  ;;  %v161_v23 = vmul.f32 1.442695, %v154_v18  ;;  %v174_v24 = vsub.f32 0.0, %v384_v19  ;;  %v157_v25 = vmul.f32 1.442695, %v152_v20  ;;  %v172_v26 = vsub.f32 0.0, %v382_v21 }
  0xa9   : > { %v445_v27 = vpop.eup %444  ;;  %v205_v47 = vmul.f32 %v443_v22, %v443_v22 }
  0xaa   : > { %v447_v28 = vpop.eup %446  ;;  %450 = vpow2.f32 %v161_v23  ;;  %v181_v29 = vmul.f32 1.442695, %v174_v24  ;;  %v177_v30 = vmul.f32 1.442695, %v172_v26  ;;  %v203_v49 = vmul.f32 %v445_v27, %v445_v27 }
  0xab   : > { %v449_v31 = vpop.eup %448  ;;  %452 = vpow2.f32 %v157_v25  ;;  %v185_v32 = vadd.f32 %v447_v28, %v443_v22 }
  0xac   : > { %454 = vpow2.f32 %v181_v29  ;;  %v183_v33 = vadd.f32 %v449_v31, %v445_v27 }
  0xad   : > { %456 = vpow2.f32 %v177_v30 }
  0xae   : > { %458 = vrcp.f32 %v185_v32 }
  0xaf   : > { %460 = vrcp.f32 %v183_v33 }
  0xb0   : > { %v451_v34 = vpop.eup %450 }
  0xb1   : > { %v453_v35 = vpop.eup %452  ;;  %v206_v59 = vmul.f32 %v451_v34, %v451_v34 }
  0xb2   : > { %v455_v36 = vpop.eup %454  ;;  %v204_v61 = vmul.f32 %v453_v35, %v453_v35 }
  0xb3   : > { %v457_v37 = vpop.eup %456  ;;  %v186_v38 = vadd.f32 %v455_v36, %v451_v34 }
  0xb4   : > { %v459_v39 = vpop.eup %458  ;;  %v184_v40 = vadd.f32 %v457_v37, %v453_v35 }
  0xb5   : > { %v461_v41 = vpop.eup %460  ;;  %v193_v42 = vmul.f32 %v459_v39, %v185_v32  ;;  %462 = vrcp.f32 %v186_v38 }
  0xb6   : > { %v191_v43 = vmul.f32 %v461_v41, %v183_v33  ;;  %464 = vrcp.f32 %v184_v40 }
  0xb7   : > { %v197_v44 = vsub.f32 2.0, %v193_v42 }
  0xb8   : > { %v195_v45 = vsub.f32 2.0, %v191_v43 }
  0xb9   : > { %v201_v46 = vmul.f32 %v459_v39, %v197_v44 }
  0xba   : > { %v199_v48 = vmul.f32 %v461_v41, %v195_v45 }
  0xbb   : > { %v463_v50 = vpop.eup %462  ;;  %v209_v51 = vmul.f32 %v205_v47, %v201_v46 }
  0xbc   : > { %v465_v52 = vpop.eup %464  ;;  %v207_v53 = vmul.f32 %v203_v49, %v199_v48  ;;  %v194_v54 = vmul.f32 %v463_v50, %v186_v38 }
  0xbd   : > { %215 = vadd.xlane.f32.xlu0 %v209_v51  ;;  %v192_v55 = vmul.f32 %v465_v52, %v184_v40 }
  0xbe   : > { %211 = vadd.xlane.f32.xlu2 %v207_v53  ;;  %v198_v56 = vsub.f32 2.0, %v194_v54 }
  0xbf   : > { %v196_v57 = vsub.f32 2.0, %v192_v55 }
  0xc0   : > { %v202_v58 = vmul.f32 %v463_v50, %v198_v56 }
  0xc1   : > { %v200_v60 = vmul.f32 %v465_v52, %v196_v57 }
  0xc2   : > { %v681_v62 = vmul.f32 %v206_v59, %v202_v58 }
  0xc3   : > { %v683_v63 = vmul.f32 %v204_v61, %v200_v60 }
  0xc4   : > { %217 = vadd.xlane.f32.xlu1 %v681_v62 }
  0xc6   : > { %213 = vadd.xlane.f32.xlu2 %v683_v63 }
 0x130   : > { %v216_v0 = vpop.xlane.xlu0 %215 }
 0x131   : > { %v212_v1 = vpop.xlane.xlu2 %211  ;;  %466 = vrcp.f32 %v216_v0  ;;  %v256_v10 = vand.u32 2147483647, %v216_v0  ;;  %v258_v11 = vand.u32 2147483648, %v216_v0  ;;  %vm252_vm2 = vweird.f32 %v216_v0 }
 0x132   : > { %468 = vrcp.f32 %v212_v1  ;;  %v228_v12 = vand.u32 2147483647, %v212_v1  ;;  %v230_v13 = vand.u32 2147483648, %v212_v1  ;;  %vm224_vm3 = vweird.f32 %v212_v1 }
 0x133   : > { %v259_v19 = vor.u32 1.1754944e-38, %v258_v11  ;;  %vm257_vm7 = vcmp.eq.f32.partialorder %v256_v10, 8.507059e+37 }
 0x134   : > { %vm229_vm6 = vcmp.eq.f32.partialorder %v228_v12, 8.507059e+37  ;;  %v231_v22 = vor.u32 1.1754944e-38, %v230_v13 }
 0x137   : > { %v467_v2 = vpop.eup %466  ;;  %v218_v3 = vpop.xlane.xlu1 %217 }
 0x138   : > { %v469_v4 = vpop.eup %468  ;;  %v248_v5 = vmul.f32 %v467_v2, %v216_v0  ;;  %470 = vrcp.f32 %v218_v3  ;;  %vm253_vm0 = vweird.f32 %v467_v2  ;;  %v270_v30 = vand.u32 2147483647, %v218_v3 }
 0x139   : > { %v220_v6 = vmul.f32 %v469_v4, %v212_v1  ;;  %v687_v7 = vpop.xlane.xlu2 %213  ;;  %vm225_vm1 = vweird.f32 %v469_v4  ;;  %vm254_vm4 = vmor %vm252_vm2, %vm253_vm0  ;;  %v272_v31 = vand.u32 2147483648, %v218_v3  ;;  %vm266_vm9 = vweird.f32 %v218_v3 }
 0x13a   : > { %v249_v8 = vsub.f32 1.0, %v248_v5  ;;  %472 = vrcp.f32 %v687_v7  ;;  %vm226_vm5 = vmor %vm224_vm3, %vm225_vm1  ;;  %v244_v35 = vand.u32 2147483648, %v687_v7  ;;  %v242_v38 = vand.u32 2147483647, %v687_v7 }
 0x13b   : > { %v221_v9 = vsub.f32 1.0, %v220_v6  ;;  %v273_v39 = vor.u32 1.1754944e-38, %v272_v31  ;;  %vm271_vm12 = vcmp.eq.f32.partialorder %v270_v30, 8.507059e+37  ;;  %vm238_vm13 = vweird.f32 %v687_v7 }
 0x13c   : > { %v250_v14 = vmul.f32 %v467_v2, %v249_v8  ;;  %v245_v43 = vor.u32 1.1754944e-38, %v244_v35  ;;  %vm243_vm15 = vcmp.eq.f32.partialorder %v242_v38, 8.507059e+37 }
 0x13d   : > { %v222_v15 = vmul.f32 %v469_v4, %v221_v9 }
 0x13e   : > { %v471_v16 = vpop.eup %470  ;;  %v251_v17 = vadd.f32 %v467_v2, %v250_v14 }
 0x13f   : > { %v223_v18 = vadd.f32 %v469_v4, %v222_v15  ;;  %v262_v20 = vmul.f32 %v471_v16, %v218_v3  ;;  %vm267_vm8 = vweird.f32 %v471_v16 }
 0x140   : > { %v473_v21 = vpop.eup %472  ;;  %v255_v23 = vsel %vm254_vm4, %v467_v2, %v251_v17  ;;  %vm268_vm11 = vmor %vm266_vm9, %vm267_vm8 }
 0x141   : > { %v227_v24 = vsel %vm226_vm5, %v469_v4, %v223_v18  ;;  %v260_v25 = vsel %vm257_vm7, %v259_v19, %v255_v23  ;;  %v263_v26 = vsub.f32 1.0, %v262_v20  ;;  %v234_v27 = vmul.f32 %v473_v21, %v687_v7 }
 0x142   : > { %v232_v28 = vsel %vm229_vm6, %v231_v22, %v227_v24  ;;  %v277_v29 = vmul.f32 %v260_v25, %v209_v51  ;;  %vm239_vm10 = vweird.f32 %v473_v21 }
 0x143   : > { %v275_v32 = vmul.f32 %v232_v28, %v207_v53  ;;  %v264_v33 = vmul.f32 %v471_v16, %v263_v26  ;;  %v235_v34 = vsub.f32 1.0, %v234_v27  ;;  %vm240_vm14 = vmor %vm238_vm13, %vm239_vm10 }
 0x144   : > { %281 = vst [vmem:[%s136_s25 + $0x10] sm:$0xff] %v277_v29 }
 0x145   : > { %279 = vst [vmem:[%s136_s25] sm:$0xff] %v275_v32  ;;  %v265_v36 = vadd.f32 %v471_v16, %v264_v33  ;;  %v236_v37 = vmul.f32 %v473_v21, %v235_v34 }
 0x147   : > { %v269_v40 = vsel %vm268_vm11, %v471_v16, %v265_v36  ;;  %v237_v41 = vadd.f32 %v473_v21, %v236_v37 }
 0x148   : > { %v274_v42 = vsel %vm271_vm12, %v273_v39, %v269_v40 }
 0x149   : > { %v278_v44 = vmul.f32 %v274_v42, %v681_v62  ;;  %v241_v45 = vsel %vm240_vm14, %v473_v21, %v237_v41 }
 0x14a   : > { %v246_v46 = vsel %vm243_vm15, %v245_v43, %v241_v45 }
 0x14b   : > { %282 = vst [vmem:[%s136_s25 + $0x18] sm:$0xff] %v278_v44  ;;  %v276_v47 = vmul.f32 %v246_v46, %v683_v63 }
 0x14d   : > { %280 = vst [vmem:[%s136_s25 + $0x8] sm:$0xff] %v276_v47 }
 0x14e   : > { %531 = shalt.err (!%p528_p4)
}
 0x14f   : > { %s574_s16 = smov 128   ;;  %s575_s20 = smov 8  }
 0x150   : > { %394 = dma.vmem_to_hbm [thread:$0]  (%p635_p10), %s297_s10, 512, %s299_s29, %s284_s30, %s574_s16, %s574_s16, %s575_s20  }
 0x151 PF: > { %p405_p5 = scmp.ge.s32.totalorder %s570_s9, 2  ;;  %s313_s21 = sand.u32 1, %s558_s6  }
 0x152   : > { %s314_s22 = scalar_lea.sflag [#allocation4], %s313_s21 }
 0x153   : > { %p401_p7 = pnand %p405_p5, %p639_p11 }
 0x155   : > { %p402_p8 = pneg %p401_p7 }
 0x157   : > { %553 = dma.done.wait (%p402_p8), %s314_s22, 512  }
 0x158   : > { %555 = vsyncadd (%p402_p8), %s314_s22, 4294966784  ;;  %p14_p9 = scmp.ge.s32.totalorder %s611_s12, 6   ;;  %s737_s6 = smov %s562_s7 }
 0x159   : > { %s738_s7 = smov %s566_s8  ;;  %s739_s8 = smov %s623_s15 }
 0x15a   : > { %s740_s9 = smov %s611_s12  ;;  %16 = sbr.rel (!%p14_p9) target bundleno = 5 (0x5), region = 69 }
 0x15f   :  { %320 = vsyncpa [#allocation3], 1 }
 0x160   :  { %322 = vsyncpa [#allocation3 + $0x1], 1 }
 0x161   :  { %323 = vsyncpa [#allocation4], 1 }
 0x162   :  { %325 = vsyncpa [#allocation4 + $0x1], 1 }

</bundles_post_ra>
